<compile_context>
chip_gen: v5e
topology: v5e:2x2
jax: 0.10.0
libtpu: 0.0.40
codegen_flags: <defaults>
</compile_context>

<pallas_src>
import functools

import jax
import jax.numpy as jnp
from jax import lax
from jax.experimental import pallas as pl
from jax.experimental.pallas import tpu as pltpu


def _round_up(x, m):
    return -(-x // m) * m


def _vmem_limit_bytes():
    """Per-generation VMEM budget with headroom (v7x: 64 MiB, v5e/v6e: 128)."""
    cap = 128 * 1024 * 1024
    try:
        info = pltpu.get_tpu_info()
        cap = int(getattr(info, "vmem_capacity_bytes", cap))
    except Exception:
        pass
    if cap <= 64 * 1024 * 1024:
        return 40 * 1024 * 1024
    return 80 * 1024 * 1024


# ----------------------------------------------------------------------------
# Fused path: VMEM-resident (D, V) table, in-kernel one-hot MXU gather.
# ----------------------------------------------------------------------------
def _glove_cov_fused_kernel(table_ref, left_ref, right_ref, cov_ref, out_ref,
                            acc_ref, *, total_batch):
    """Grid = (cores, batch tiles).  One step handles tile_b batch elements.

    table_ref : (D, V)       storage dtype, resident every step
    left_ref  : (1, tile_b)  int32 indices (batch on lanes)
    right_ref : (1, tile_b)  int32 indices
    cov_ref   : (1, tile_b)  f32 targets
    out_ref   : (1, 1, 1)    f32 per-core partial SSE (written at last tile)
    acc_ref   : (1, tile_b)  f32 lane-dense partial SSE accumulator
    """
    c = pl.program_id(0)
    i = pl.program_id(1)

    @pl.when(i == 0)
    def _init():
        acc_ref[...] = jnp.zeros_like(acc_ref)

    d, v = table_ref.shape
    tile_b = left_ref.shape[1]

    t = table_ref[...]                                          # (D, V)

    # Exact one-hot selection matrices (V, tile_b): P[v, b] = (v == idx[b]).
    vocab = lax.broadcasted_iota(jnp.int32, (v, tile_b), 0)
    p_l = (vocab == left_ref[...]).astype(jnp.float32).astype(t.dtype)
    p_r = (vocab == right_ref[...]).astype(jnp.float32).astype(t.dtype)

    # Gather via MXU: (D, V) @ (V, tile_b) -> lane-dense (D, tile_b), f32.
    l = jnp.dot(t, p_l, preferred_element_type=jnp.float32)
    r = jnp.dot(t, p_r, preferred_element_type=jnp.float32)

    sim = jnp.sum(l * r, axis=0, keepdims=True)                 # (1, tile_b)
    err = sim - cov_ref[...]

    # Mask padded batch lanes (padded indices point at row 0) before squaring.
    lane = lax.broadcasted_iota(jnp.int32, (1, tile_b), 1)
    gtile = c * pl.num_programs(1) + i
    err = jnp.where(gtile * tile_b + lane < total_batch, err, 0.0)

    acc_ref[...] += err * err

    @pl.when(i == pl.num_programs(1) - 1)
    def _finalize():
        out_ref[0] = jnp.sum(acc_ref[...], axis=1, keepdims=True)


# ----------------------------------------------------------------------------
# Streamed path (large vocab): wrapper row-gather, kernel consumes bf16 streams.
# ----------------------------------------------------------------------------
def _glove_cov_streamed_kernel(left_ref, right_ref, cov_ref, out_ref, acc_ref,
                               *, d_chunk):
    """left/right_ref: (d_pad, tile_b) storage-dtype streams, batch on lanes.

    Padded batch columns and padded D rows are zero, and padded covariances
    are zero, so err == 0 there — no in-kernel mask needed.
    """
    i = pl.program_id(1)

    @pl.when(i == 0)
    def _init():
        acc_ref[...] = jnp.zeros_like(acc_ref)

    d_pad, tile_b = left_ref.shape
    n_chunks = d_pad // d_chunk

    # Chunked f32 accumulation keeps live temporaries to a few vregs even at
    # large tile_b (review item 4).
    def body(ci, sim):
        d0 = pl.multiple_of(ci * d_chunk, d_chunk)
        lc = left_ref[pl.ds(d0, d_chunk), :].astype(jnp.float32)
        rc = right_ref[pl.ds(d0, d_chunk), :].astype(jnp.float32)
        return sim + jnp.sum(lc * rc, axis=0, keepdims=True)

    sim = lax.fori_loop(0, n_chunks, body,
                        jnp.zeros((1, tile_b), jnp.float32), unroll=True)

    err = sim - cov_ref[...]
    acc_ref[...] += err * err

    @pl.when(i == pl.num_programs(1) - 1)
    def _finalize():
        out_ref[0] = jnp.sum(acc_ref[...], axis=1, keepdims=True)


# ----------------------------------------------------------------------------
# Wrapper
# ----------------------------------------------------------------------------
def glove_cov_forward(emb_table, left, right, covariances, *,
                      tile_b=2048, store_dtype=jnp.bfloat16,
                      num_core_splits=2, force_streamed=False,
                      fused_vocab_limit=1024):
    """Scalar MSE loss matching GloVeCov.forward.

    store_dtype=float32 gives exact parity with PyTorch f32 semantics;
    bfloat16 (default) quantizes embedding storage only — math stays f32.
    """
    emb_table = jnp.asarray(emb_table, jnp.float32)
    V, D = emb_table.shape
    B = int(left.shape[0])
    left = jnp.asarray(left, jnp.int32)
    right = jnp.asarray(right, jnp.int32)
    cov = jnp.asarray(covariances, jnp.float32)

    LANES = 128
    ncores = max(1, int(num_core_splits))
    per_core = -(-B // ncores)
    tile_b = max(LANES, min(int(tile_b), _round_up(per_core, LANES)))
    tile_b = (tile_b // LANES) * LANES
    tiles_per_core = max(1, -(-per_core // tile_b))
    b_pad = ncores * tiles_per_core * tile_b

    table = emb_table.astype(store_dtype)
    cov_p = jnp.pad(cov, (0, b_pad - B)).reshape(1, b_pad)

    use_fused = ((not force_streamed)
                 and V <= int(fused_vocab_limit)
                 and V * D * table.dtype.itemsize <= 8 * 1024 * 1024)

    if use_fused:
        left_p = jnp.pad(left, (0, b_pad - B)).reshape(1, b_pad)
        right_p = jnp.pad(right, (0, b_pad - B)).reshape(1, b_pad)
        table_t = table.T                                   # (D, V), VMEM-resident
        kernel = functools.partial(_glove_cov_fused_kernel, total_batch=B)
        in_specs = [
            pl.BlockSpec((D, V), lambda c, i: (0, 0)),
            pl.BlockSpec((1, tile_b), lambda c, i: (0, c * tiles_per_core + i)),
            pl.BlockSpec((1, tile_b), lambda c, i: (0, c * tiles_per_core + i)),
            pl.BlockSpec((1, tile_b), lambda c, i: (0, c * tiles_per_core + i)),
        ]
        args = (table_t, left_p, right_p, cov_p)
    else:
        # TODO(synk): variant B — DMA row-gather from an HBM table inside the
        # kernel (memory_space=pl.ANY + scalar-prefetched indices) to remove
        # this wrapper gather as well.
        d_chunk = 32
        d_pad = _round_up(D, d_chunk)
        left_rows = jnp.take(table, left, axis=0)           # (B, D) major-axis gather
        right_rows = jnp.take(table, right, axis=0)
        pad = ((0, b_pad - B), (0, d_pad - D))
        left_t = jnp.pad(left_rows, pad).T                  # (d_pad, b_pad), lane-dense
        right_t = jnp.pad(right_rows, pad).T
        kernel = functools.partial(_glove_cov_streamed_kernel, d_chunk=d_chunk)
        in_specs = [
            pl.BlockSpec((d_pad, tile_b), lambda c, i: (0, c * tiles_per_core + i)),
            pl.BlockSpec((d_pad, tile_b), lambda c, i: (0, c * tiles_per_core + i)),
            pl.BlockSpec((1, tile_b), lambda c, i: (0, c * tiles_per_core + i)),
        ]
        args = (left_t, right_t, cov_p)

    out = pl.pallas_call(
        kernel,
        out_shape=jax.ShapeDtypeStruct((ncores, 1, 1), jnp.float32),
        grid_spec=pltpu.PrefetchScalarGridSpec(
            num_scalar_prefetch=0,
            grid=(ncores, tiles_per_core),
            in_specs=in_specs,
            out_specs=pl.BlockSpec((1, 1, 1), lambda c, i: (c, 0, 0)),
            scratch_shapes=[pltpu.VMEM((1, tile_b), jnp.float32)],
        ),
        compiler_params=pltpu.CompilerParams(
            dimension_semantics=("parallel", "arbitrary"),
            vmem_limit_bytes=_vmem_limit_bytes(),
        ),
    )(*args)

    # Per-core partial SSEs -> mean in the wrapper.
    return jnp.sum(out) / jnp.float32(B)


def _reference(emb_table, left, right, covariances, store_dtype=jnp.float32):
    """Pure-JAX replica of GloVeCov.forward (optionally bf16 storage)."""
    t = emb_table.astype(store_dtype).astype(jnp.float32)
    l = jnp.take(t, left, axis=0)
    r = jnp.take(t, right, axis=0)
    sim = jnp.sum(l * r, axis=1)
    return jnp.mean((sim - covariances.astype(jnp.float32)) ** 2)


if __name__ == "__main__":
    key = jax.random.PRNGKey(0)
    vocab_size, dimension = 64, 32      # nn.Embedding(size, dimension)
    batch = 16

    k_emb, k_l, k_r, k_c = jax.random.split(key, 4)
    emb_table = jax.random.normal(k_emb, (vocab_size, dimension),
                                  dtype=jnp.float32)
    left = jax.random.randint(k_l, (batch,), 0, vocab_size, dtype=jnp.int32)
    right = jax.random.randint(k_r, (batch,), 0, vocab_size, dtype=jnp.int32)
    covariances = jax.random.normal(k_c, (batch,), dtype=jnp.float32)

    # Fused (VMEM-resident table) path, f32 storage: exact PyTorch parity.
    loss_f32 = jax.block_until_ready(glove_cov_forward(
        emb_table, left, right, covariances, store_dtype=jnp.float32))
    ref_f32 = _reference(emb_table, left, right, covariances, jnp.float32)
    assert jnp.allclose(loss_f32, ref_f32, rtol=1e-5, atol=1e-5), (loss_f32, ref_f32)

    # Fused fast path: bf16 storage, f32 math.
    loss_bf16 = jax.block_until_ready(glove_cov_forward(
        emb_table, left, right, covariances))
    ref_bf16 = _reference(emb_table, left, right, covariances, jnp.bfloat16)
    assert jnp.allclose(loss_bf16, ref_bf16, rtol=1e-5, atol=1e-5), (loss_bf16, ref_bf16)

    # Streamed fallback path (large-vocab route): bf16 row-gather + transpose.
    loss_str = jax.block_until_ready(glove_cov_forward(
        emb_table, left, right, covariances, force_streamed=True))
    assert jnp.allclose(loss_str, ref_bf16, rtol=1e-5, atol=1e-5), (loss_str, ref_bf16)

    print("KERNEL_OK")
</pallas_src>

<mosaic_0001>
module attributes {stable_mosaic.version = 11 : i64} {
  func.func @_glove_cov_fused_kernel(%arg0: i32, %arg1: i32, %arg2: memref<32x64xf32, #tpu.memory_space<vmem>>, %arg3: memref<1x128xi32, #tpu.memory_space<vmem>>, %arg4: memref<1x128xi32, #tpu.memory_space<vmem>>, %arg5: memref<1x128xf32, #tpu.memory_space<vmem>>, %arg6: memref<1x1x1xf32, #tpu.memory_space<vmem>>, %arg7: memref<1x128xf32, #tpu.memory_space<vmem>>) attributes {dimension_semantics = [#tpu.dimension_semantics<parallel>, #tpu.dimension_semantics<arbitrary>], iteration_bounds = array<i64: 2, 1>, scalar_prefetch = 0 : i64, scratch_operands = 1 : i64, tpu.core_type = #tpu.core_type<tc>, window_params = [{pipeline_mode = #tpu.pipeline_mode<synchronous>, transform_indices = @transform_0, window_bounds = array<i64: 32, 64>}, {transform_indices = @transform_1, window_bounds = array<i64: 1, 128>}, {transform_indices = @transform_2, window_bounds = array<i64: 1, 128>}, {transform_indices = @transform_3, window_bounds = array<i64: 1, 128>}, {transform_indices = @transform_4, window_bounds = array<i64: 1, 1, 1>}]} {
    %c0_i32 = arith.constant 0 : i32
    %0 = arith.cmpi eq, %arg1, %c0_i32 : i32
    %1 = arith.extui %0 : i1 to i32
    %c0_i32_0 = arith.constant 0 : i32
    %2 = arith.cmpi ne, %1, %c0_i32_0 : i32
    scf.if %2 {
      %cst_17 = arith.constant 0.000000e+00 : f32
      %39 = vector.broadcast %cst_17 : f32 to vector<1x128xf32>
      %c0_18 = arith.constant 0 : index
      %c0_19 = arith.constant 0 : index
      %40 = vector.load %arg7[%c0_18, %c0_19] : memref<1x128xf32, #tpu.memory_space<vmem>>, vector<1x128xf32>
      tpu.vector_store %arg7[%c0_18, %c0_19], %39 {strides = array<i32>} : memref<1x128xf32, #tpu.memory_space<vmem>>, vector<1x128xf32>,
    } else {
    }
    %c0 = arith.constant 0 : index
    %c0_1 = arith.constant 0 : index
    %3 = vector.load %arg2[%c0, %c0_1] : memref<32x64xf32, #tpu.memory_space<vmem>>, vector<32x64xf32>
    %4 = tpu.iota {dimensions = array<i32: 0>} : vector<64x128xi32>
    %c0_2 = arith.constant 0 : index
    %c0_3 = arith.constant 0 : index
    %5 = vector.load %arg3[%c0_2, %c0_3] : memref<1x128xi32, #tpu.memory_space<vmem>>, vector<1x128xi32>
    %6 = vector.broadcast %5 : vector<1x128xi32> to vector<64x128xi32>
    %7 = arith.cmpi eq, %4, %6 : vector<64x128xi32>
    %8 = arith.extui %7 : vector<64x128xi1> to vector<64x128xi32>
    %9 = arith.sitofp %8 : vector<64x128xi32> to vector<64x128xf32>
    %c0_4 = arith.constant 0 : index
    %c0_5 = arith.constant 0 : index
    %10 = vector.load %arg4[%c0_4, %c0_5] : memref<1x128xi32, #tpu.memory_space<vmem>>, vector<1x128xi32>
    %11 = vector.broadcast %10 : vector<1x128xi32> to vector<64x128xi32>
    %12 = arith.cmpi eq, %4, %11 : vector<64x128xi32>
    %13 = arith.extui %12 : vector<64x128xi1> to vector<64x128xi32>
    %14 = arith.sitofp %13 : vector<64x128xi32> to vector<64x128xf32>
    %cst = arith.constant dense<0.000000e+00> : vector<32x128xf32>
    %15 = tpu.matmul %3, %9, %cst {dimension_numbers = #tpu.dot_dimension_numbers<[1], [0], [0], [1], [0, 0, 1, 1], [], []>} : vector<32x64xf32>, vector<64x128xf32>, vector<32x128xf32> -> vector<32x128xf32>
    %cst_6 = arith.constant dense<0.000000e+00> : vector<32x128xf32>
    %16 = tpu.matmul %3, %14, %cst_6 {dimension_numbers = #tpu.dot_dimension_numbers<[1], [0], [0], [1], [0, 0, 1, 1], [], []>} : vector<32x64xf32>, vector<64x128xf32>, vector<32x128xf32> -> vector<32x128xf32>
    %17 = arith.mulf %15, %16 : vector<32x128xf32>
    %cst_7 = arith.constant dense<0.000000e+00> : vector<128xf32>
    %18 = vector.multi_reduction <add>, %17, %cst_7 [0] : vector<32x128xf32> to vector<128xf32>
    %19 = vector.shape_cast %18 : vector<128xf32> to vector<1x128xf32>
    %c0_8 = arith.constant 0 : index
    %c0_9 = arith.constant 0 : index
    %20 = vector.load %arg5[%c0_8, %c0_9] : memref<1x128xf32, #tpu.memory_space<vmem>>, vector<1x128xf32>
    %21 = arith.subf %19, %20 : vector<1x128xf32>
    %22 = tpu.iota {dimensions = array<i32: 1>} : vector<1x128xi32>
    %c1_i32 = arith.constant 1 : i32
    %23 = arith.muli %arg0, %c1_i32 : i32
    %24 = arith.addi %23, %arg1 : i32
    %c128_i32 = arith.constant 128 : i32
    %25 = arith.muli %24, %c128_i32 : i32
    %26 = vector.broadcast %25 : i32 to vector<1x128xi32>
    %27 = arith.addi %26, %22 : vector<1x128xi32>
    %c16_i32 = arith.constant 16 : i32
    %28 = vector.broadcast %c16_i32 : i32 to vector<1x128xi32>
    %29 = arith.cmpi slt, %27, %28 : vector<1x128xi32>
    %cst_10 = arith.constant 0.000000e+00 : f32
    %30 = vector.broadcast %cst_10 : f32 to vector<1x128xf32>
    %31 = arith.select %29, %21, %30 : vector<1x128xi1>, vector<1x128xf32>
    %c0_11 = arith.constant 0 : index
    %c0_12 = arith.constant 0 : index
    %32 = vector.load %arg7[%c0_11, %c0_12] : memref<1x128xf32, #tpu.memory_space<vmem>>, vector<1x128xf32>
    %33 = arith.mulf %31, %31 : vector<1x128xf32>
    %34 = arith.addf %32, %33 : vector<1x128xf32>
    %c0_13 = arith.constant 0 : index
    %c0_14 = arith.constant 0 : index
    %35 = vector.load %arg7[%c0_13, %c0_14] : memref<1x128xf32, #tpu.memory_space<vmem>>, vector<1x128xf32>
    tpu.vector_store %arg7[%c0_13, %c0_14], %34 {strides = array<i32>} : memref<1x128xf32, #tpu.memory_space<vmem>>, vector<1x128xf32>,
    %c0_i32_15 = arith.constant 0 : i32
    %36 = arith.cmpi eq, %arg1, %c0_i32_15 : i32
    %37 = arith.extui %36 : i1 to i32
    %c0_i32_16 = arith.constant 0 : i32
    %38 = arith.cmpi ne, %37, %c0_i32_16 : i32
    scf.if %38 {
      %c0_17 = arith.constant 0 : index
      %c0_18 = arith.constant 0 : index
      %39 = vector.load %arg7[%c0_17, %c0_18] : memref<1x128xf32, #tpu.memory_space<vmem>>, vector<1x128xf32>
      %cst_19 = arith.constant dense<0.000000e+00> : vector<1xf32>
      %40 = vector.multi_reduction <add>, %39, %cst_19 [1] : vector<1x128xf32> to vector<1xf32>
      %41 = vector.shape_cast %40 : vector<1xf32> to vector<1x1xf32>
      %c0_20 = arith.constant 0 : index
      %c0_21 = arith.constant 0 : index
      %c0_22 = arith.constant 0 : index
      %42 = vector.load %arg6[%c0_20, %c0_21, %c0_22] : memref<1x1x1xf32, #tpu.memory_space<vmem>>, vector<1x1x1xf32>
      %43 = vector.shape_cast %42 : vector<1x1x1xf32> to vector<1x1xf32>
      %44 = vector.shape_cast %41 : vector<1x1xf32> to vector<1x1x1xf32>
      tpu.vector_store %arg6[%c0_20, %c0_21, %c0_22], %44 {strides = array<i32>} : memref<1x1x1xf32, #tpu.memory_space<vmem>>, vector<1x1x1xf32>,
    } else {
    }
    return
  }
  func.func @transform_0(%arg0: i32, %arg1: i32) -> (i32, i32) {
    %c0_i32 = arith.constant 0 : i32
    %c0_i32_0 = arith.constant 0 : i32
    %c0_i32_1 = arith.constant 0 : i32
    return %c0_i32, %c0_i32_0 : i32, i32
  }
  func.func @transform_1(%arg0: i32, %arg1: i32) -> (i32, i32) {
    %c1_i32 = arith.constant 1 : i32
    %0 = arith.muli %arg0, %c1_i32 : i32
    %1 = arith.addi %0, %arg1 : i32
    %c0_i32 = arith.constant 0 : i32
    %c0_i32_0 = arith.constant 0 : i32
    return %c0_i32, %1 : i32, i32
  }
  func.func @transform_2(%arg0: i32, %arg1: i32) -> (i32, i32) {
    %c1_i32 = arith.constant 1 : i32
    %0 = arith.muli %arg0, %c1_i32 : i32
    %1 = arith.addi %0, %arg1 : i32
    %c0_i32 = arith.constant 0 : i32
    %c0_i32_0 = arith.constant 0 : i32
    return %c0_i32, %1 : i32, i32
  }
  func.func @transform_3(%arg0: i32, %arg1: i32) -> (i32, i32) {
    %c1_i32 = arith.constant 1 : i32
    %0 = arith.muli %arg0, %c1_i32 : i32
    %1 = arith.addi %0, %arg1 : i32
    %c0_i32 = arith.constant 0 : i32
    %c0_i32_0 = arith.constant 0 : i32
    return %c0_i32, %1 : i32, i32
  }
  func.func @transform_4(%arg0: i32, %arg1: i32) -> (i32, i32, i32) {
    %c0_i32 = arith.constant 0 : i32
    %c0_i32_0 = arith.constant 0 : i32
    %c0_i32_1 = arith.constant 0 : i32
    return %arg0, %c0_i32, %c0_i32_0 : i32, i32, i32
  }
}

</mosaic_0001>

<bundles_post_ra>
// kernel: tpu_custom_call.1
= control target key start
LH: loop header
LB: loop body
LE: loop exit
PB: predicated region body
PF: predicated region fallthrough
CT: control target
= control target key end

     0   :  { %9 = vsyncpa [#allocation4], 0  ;;  %s1045_s0 = inlined_call_operand.hbm [shape: f32[32,64], index: 0, kind: input, shape index: {}]   ;;  %s1046_s1 = inlined_call_operand.hbm [shape: s32[1,256], index: 1, kind: input, shape index: {}]   ;;  %s1047_s2 = inlined_call_operand.hbm [shape: s32[1,256], index: 2, kind: input, shape index: {}]   ;;  %s1048_s3 = inlined_call_operand.vmem [shape: f32[1,256], index: 3, kind: input, shape index: {}]   ;;  %s1049_s4 = inlined_call_operand.vmem [shape: f32[2,1,1], index: 4, kind: output, shape index: {}]  }
   0x1   :  { %10 = vsyncpa [#allocation6], 0 }
   0x2   :  { %12 = vsyncpa [#allocation6 + $0x1], 0  ;;  %s898_s15 = smov 0   ;;  %s900_s16 = smov 0  }
   0x3   :  { %s902_s17 = smov 0   ;;  %s904_s18 = smov 0  }
   0x4   :  { %s906_s19 = smov 0   ;;  %s908_s20 = smov 0  }
   0x5 LB: > { %s30_s21 = sadd.s32 1, %s862_s19  ;;  %s60_s22 = sadd.s32 1, %s854_s17  ;;  %s866_s20 = sphi %s908_s20, %s18_s20   ;;  %s862_s19 = sphi %s906_s19, %s1059_s19   ;;  %s858_s18 = sphi %s904_s18, %s1058_s18   ;;  %s854_s17 = sphi %s902_s17, %s1057_s17   ;;  %s850_s16 = sphi %s900_s16, %s1056_s16   ;;  %s846_s15 = sphi %s898_s15, %s1055_s15  }
   0x6   : > { %p32_p0 = scmp.ge.s32.totalorder %s30_s21, 2  ;;  %p67_p1 = scmp.ne.s32.totalorder %s854_s17, %s850_s16 }
   0x7   : > { %p68_p2 = scmp.eq.s32.totalorder %s866_s20, 0  ;;  %p73_p3 = scmp.ne.s32.totalorder %s850_s16, %s846_s15 }
   0x8   : > { %s1061_s21 = smov (%p32_p0, %s30_s21), 0  ;;  %p665_p5 = scmp.lt.s32.totalorder %s866_s20, 2 }
   0x9   : > { %p937_p4 = por %p68_p2, %p67_p1  ;;  %s57_s24 = ssub.s32 %s862_s19, %s1061_s21 }
   0xa   : > { %p58_p6 = scmp.eq.s32.totalorder %s57_s24, 0  ;;  %s193_s25 = sand.u32 1, %s866_s20  }
   0xb   : > { %s195_s26 = sand.u32 1, %s854_s17   ;;  %s200_s30 = scalar_lea.hbm %s1046_s1, %s862_s19 }
   0xc   : > { %s947_s27 = scalar_select %p58_p6, %s854_s17, %s60_s22  }
   0xd   : > { %s202_s5 = sshll.u32 %s200_s30, 4  ;;  %s196_s6 = scalar_lea.vmem [#allocation5], %s195_s26  ;;  %s203_s5 = int_to_ptr.hbm [resolvable:$true] %s202_s5 }
   0xe   : > { %s204_s7 = sshll.u32 %s196_s6, 4  ;;  %p955_p7 = pnand %p665_p5, %p937_p4  ;;  %s205_s7 = int_to_ptr.vmem [resolvable:$true] %s204_s7 }
   0xf   : > { %s579_s9 = sadd.s32 4294967295, %s866_s20   ;;  %s194_s10 = scalar_lea.sflag [#allocation6], %s193_s25 }
  0x10   : > { %660 = dma.hbm_to_vmem [thread:$0]  (!%p955_p7), %s203_s5, 16, %s205_s7, %s194_s10  }
  0x11   : > { %p962_p8 = scmp.eq.s32.totalorder %s579_s9, 0  ;;  %p581_p9 = scmp.ge.s32.totalorder %s866_s20, 1 }
  0x12   : > { %p166_p10 = scmp.lt.s32.totalorder %s866_s20, 3  ;;  %s177_s22 = sshll.u32 %s1045_s0, 4  ;;  %s178_s22 = int_to_ptr.hbm [resolvable:$true] %s177_s22 }
  0x13   : > { %p973_p11 = por %p962_p8, %p73_p3  ;;  %s868_s24 = smov [#allocation3]  }
  0x14   : > { %p980_p12 = pnand %p581_p9, %p166_p10  ;;  %s179_s15 = sshll.u32 %s868_s24, 4  ;;  %s180_s15 = int_to_ptr.vmem [resolvable:$true] %s179_s15 }
  0x15   : > { %s218_s29 = scalar_lea.hbm %s1047_s2, %s862_s19  ;;  %s214_s5 = scalar_lea.vmem [#allocation7], %s195_s26 }
  0x16   : > { %p653_p13 = pneg %p980_p12  ;;  %s220_s30 = sshll.u32 %s218_s29, 4  ;;  %s221_s30 = int_to_ptr.hbm [resolvable:$true] %s220_s30 }
  0x17   : > { %s222_s6 = sshll.u32 %s214_s5, 4  ;;  %s869_s7 = smov 128   ;;  %s223_s6 = int_to_ptr.vmem [resolvable:$true] %s222_s6 }
  0x18   : > { %p654_p0 = pnand %p653_p13, %p962_p8  ;;  %s870_s13 = smov 8  }
  0x19   : > { %663 = dma.hbm_to_vmem [thread:$0]  (!%p955_p7), %s221_s30, 16, %s223_s6, %s194_s10  }
  0x1a   : > { %656 = dma.hbm_to_vmem [thread:$0]  (!%p654_p0), %s178_s22, 512, %s180_s15, [#allocation4], %s869_s7, %s869_s7, %s870_s13  }
  0x1b   : > { %239 = sbr.rel (%p980_p12) target bundleno = 349 (0x15d), region = 36 }
  0x20   : > { %837 = dma.done.wait (%p962_p8), [#allocation4], 512  }
  0x21   : > { %839 = vsyncadd (%p962_p8), [#allocation4], 4294966784  ;;  %s246_s26 = sand.u32 1, %s579_s9   ;;  %s248_s14 = sand.u32 1, %s850_s16  }
  0x22   : > { %s247_s24 = scalar_lea.sflag [#allocation6], %s246_s26  ;;  %s249_s25 = scalar_lea.vmem [#allocation5], %s248_s14 }
  0x23   : > { %841 = dma.done.wait (%p973_p11), %s247_s24, 32  }
  0x24   : > { %843 = vsyncadd (%p973_p11), %s247_s24, 4294967264  ;;  %v308_v0 = vlaneseq  ;;  %v720_v5 = vld [vmem:[%s249_s25] ss:$0 sm:$0xff]  ;;  %s258_s8 = scalar_lea.vmem [#allocation7], %s248_s14  ;;  %v871_v8 = vmov 1.0   ;;  %v304_v12 = vld [vmem:[#allocation3] sm:$0xff] }
  0x25   : > { %v721_v6 = vld [vmem:[%s258_s8] ss:$0 sm:$0xff]  ;;  %v306_v13 = vld [vmem:[#allocation3 + $0x10] sm:$0xff]  ;;  %v305_v14 = vld [vmem:[#allocation3 + $0x8] sm:$0xff]  ;;  %v872_v16 = vmov 0.0   ;;  %p292_p1 = scmp.lt.s32.totalorder %s858_s18, 1 }
  0x26   : > { %v1006_v1 = vshrl.u32 %v308_v0, 7  ;;  %v307_v15 = vld [vmem:[#allocation3 + $0x18] sm:$0xff]  ;;  %303 = vst [vmem:[#allocation2] sm:$0x1] %v872_v16  ;;  %s626_s9 = sshll.u32 %s858_s18, 7  ;;  %v456_v34 = vand.u32 127, %v308_v0 }
  0x27   : > { %s1063_s18 = smov (!%p292_p1, %s858_s18), 1  ;;  %v459_v36 = vstv %s626_s9 }
  0x28   : > { %v316_v2 = vadd.s32 56, %v1006_v1  ;;  %v315_v3 = vadd.s32 48, %v1006_v1  ;;  %v314_v4 = vadd.s32 40, %v1006_v1  ;;  %v313_v7 = vadd.s32 32, %v1006_v1  ;;  %s294_s12 = scalar_lea.vmem %s1048_s3, %s1063_s18  ;;  %s298_s15 = scalar_lea.vmem %s1049_s4, %s1063_s18 }
  0x29   : > { %v312_v9 = vadd.s32 24, %v1006_v1  ;;  %v311_v10 = vadd.s32 16, %v1006_v1  ;;  %v310_v11 = vadd.s32 8, %v1006_v1  ;;  %vm319_vm14 = vcmp.eq.s32.totalorder %v1006_v1, %v720_v5  ;;  %v453_v40 = vld [vmem:[%s294_s12] sm:$0x1] }
  0x2a   : > { %vm326_vm0 = vcmp.eq.s32.totalorder %v316_v2, %v720_v5  ;;  %vm325_vm1 = vcmp.eq.s32.totalorder %v315_v3, %v720_v5  ;;  %vm352_vm2 = vcmp.eq.s32.totalorder %v316_v2, %v721_v6  ;;  %vm351_vm3 = vcmp.eq.s32.totalorder %v315_v3, %v721_v6 }
  0x2b   : > { %602 = vmatpush.msk.msra.mxu0 %vm326_vm0, %v871_v8  ;;  %629 = vmatpush.msk.msra.mxu2 %vm326_vm0, %v871_v8  ;;  %vm324_vm4 = vcmp.eq.s32.totalorder %v314_v4, %v720_v5  ;;  %vm350_vm5 = vcmp.eq.s32.totalorder %v314_v4, %v721_v6  ;;  %vm323_vm6 = vcmp.eq.s32.totalorder %v313_v7, %v720_v5  ;;  %vm369_vm0 = vcmask 523264  }
  0x2c   : > { %614 = vmatpush.msk.msra.mxu1 %vm352_vm2, %v871_v8  ;;  %637 = vmatpush.msk.msra.mxu3 %vm352_vm2, %v871_v8  ;;  %vm349_vm7 = vcmp.eq.s32.totalorder %v313_v7, %v721_v6  ;;  %vm322_vm8 = vcmp.eq.s32.totalorder %v312_v9, %v720_v5  ;;  %vm348_vm9 = vcmp.eq.s32.totalorder %v312_v9, %v721_v6  ;;  %vm471_vm2 = vcmask 1040384  }
  0x2d   : > { %603 = vmatpush.msk.msra.mxu0 %vm325_vm1, %v871_v8  ;;  %630 = vmatpush.msk.msra.mxu2 %vm325_vm1, %v871_v8  ;;  %vm321_vm10 = vcmp.eq.s32.totalorder %v311_v10, %v720_v5  ;;  %vm347_vm11 = vcmp.eq.s32.totalorder %v311_v10, %v721_v6  ;;  %vm320_vm12 = vcmp.eq.s32.totalorder %v310_v11, %v720_v5  ;;  %v463_v44 = vld [vmem:[#allocation2] sm:$0x1] }
  0x2e   : > { %615 = vmatpush.msk.msra.mxu1 %vm351_vm3, %v871_v8  ;;  %638 = vmatpush.msk.msra.mxu3 %vm351_vm3, %v871_v8  ;;  %vm346_vm13 = vcmp.eq.s32.totalorder %v310_v11, %v721_v6  ;;  %vm345_vm15 = vcmp.eq.s32.totalorder %v1006_v1, %v721_v6  ;;  %v460_v38 = vadd.s32 %v459_v36, %v456_v34  ;;  %vm475_vm3 = vcmask 0  }
  0x2f   : > { %604 = vmatpush.msk.msra.mxu0 %vm324_vm4, %v871_v8  ;;  %631 = vmatpush.msk.msra.mxu2 %vm324_vm4, %v871_v8 }
  0x30   : > { %616 = vmatpush.msk.msra.mxu1 %vm350_vm5, %v871_v8  ;;  %639 = vmatpush.msk.msra.mxu3 %vm350_vm5, %v871_v8  ;;  %vm461_vm1 = vcmp.lt.s32.totalorder %v460_v38, 16 }
  0x31   : > { %605 = vmatpush.msk.msra.mxu0 %vm323_vm6, %v871_v8  ;;  %632 = vmatpush.msk.msra.mxu2 %vm323_vm6, %v871_v8 }
  0x32   : > { %617 = vmatpush.msk.msra.mxu1 %vm349_vm7, %v871_v8  ;;  %640 = vmatpush.msk.msra.mxu3 %vm349_vm7, %v871_v8 }
  0x33   : > { %606 = vmatpush.msk.msra.mxu0 %vm322_vm8, %v871_v8  ;;  %633 = vmatpush.msk.msra.mxu2 %vm322_vm8, %v871_v8 }
  0x34   : > { %618 = vmatpush.msk.msra.mxu1 %vm348_vm9, %v871_v8  ;;  %641 = vmatpush.msk.msra.mxu3 %vm348_vm9, %v871_v8 }
  0x35   : > { %607 = vmatpush.msk.msra.mxu0 %vm321_vm10, %v871_v8  ;;  %634 = vmatpush.msk.msra.mxu2 %vm321_vm10, %v871_v8 }
  0x36   : > { %619 = vmatpush.msk.msra.mxu1 %vm347_vm11, %v871_v8  ;;  %642 = vmatpush.msk.msra.mxu3 %vm347_vm11, %v871_v8 }
  0x37   : > { %608 = vmatpush.msk.msra.mxu0 %vm320_vm12, %v871_v8  ;;  %635 = vmatpush.msk.msra.mxu2 %vm320_vm12, %v871_v8 }
  0x38   : > { %620 = vmatpush.msk.msra.mxu1 %vm346_vm13, %v871_v8  ;;  %643 = vmatpush.msk.msra.mxu3 %vm346_vm13, %v871_v8 }
  0x39   : > { %609 = vmatpush.msk.msra.mxu0 %vm319_vm14, %v871_v8  ;;  %636 = vmatpush.msk.msra.mxu2 %vm319_vm14, %v871_v8 }
  0x3a   : > { %621 = vmatpush.msk.msra.mxu1 %vm345_vm15, %v871_v8  ;;  %644 = vmatpush.msk.msra.mxu3 %vm345_vm15, %v871_v8 }
  0x3b   : > { %610 = vmatmul.msk.f32.vlgmr.msra.gmra.mxu0 %vm369_vm0, %v304_v12  ;;  %612 = vmatmul.msk.f32.vlgmr.msra.gmra.mxu2 %vm369_vm0, %v306_v13 }
  0x3c   : > { %622 = vmatmul.msk.f32.vlgmr.msra.gmra.mxu1 %vm369_vm0, %v304_v12  ;;  %624 = vmatmul.msk.f32.vlgmr.msra.gmra.mxu3 %vm369_vm0, %v306_v13 }
  0x43   : > { %611 = vmatmul.msk.f32.gmra.mxu0 %vm369_vm0, %v305_v14  ;;  %613 = vmatmul.msk.f32.gmra.mxu2 %vm369_vm0, %v307_v15 }
  0x44   : > { %623 = vmatmul.msk.f32.gmra.mxu1 %vm369_vm0, %v305_v14  ;;  %625 = vmatmul.msk.f32.gmra.mxu3 %vm369_vm0, %v307_v15 }
  0xb8   : > { %v399_v17 = vpop.f32.mrf.mxu0 }
  0xb9   : > { %v428_v18 = vpop.f32.mrf.mxu1 }
  0xba   : > { %v440_v23 = vmul.f32 %v428_v18, %v399_v17 }
  0xbe   : > { %v405_v19 = vpop.f32.mrf.mxu2 }
  0xbf   : > { %v434_v20 = vpop.f32.mrf.mxu3 }
  0xc0   : > { %v402_v21 = vpop.f32.mrf.mxu0  ;;  %v442_v26 = vmul.f32 %v434_v20, %v405_v19 }
  0xc1   : > { %v431_v22 = vpop.f32.mrf.mxu1 }
  0xc2   : > { %v441_v24 = vmul.f32 %v431_v22, %v402_v21 }
  0xc4   : > { %v444_v25 = vadd.f32 %v441_v24, %v440_v23 }
  0xc6   : > { %v408_v27 = vpop.f32.mrf.mxu2  ;;  %v445_v30 = vadd.f32 %v444_v25, %v442_v26 }
  0xc7   : > { %v437_v28 = vpop.f32.mrf.mxu3 }
  0xc8   : > { %v443_v29 = vmul.f32 %v437_v28, %v408_v27 }
  0xca   : > { %v446_v31 = vadd.f32 %v445_v30, %v443_v29 }
  0xcc   : > { %v447_v32 = vrot.slane %v446_v31, 4 }
  0xce   : > { %v448_v33 = vadd.f32 %v447_v32, %v446_v31 }
  0xd0   : > { %v449_v35 = vrot.slane %v448_v33, 2 }
  0xd2   : > { %v450_v37 = vadd.f32 %v449_v35, %v448_v33 }
  0xd4   : > { %v451_v39 = vrot.slane %v450_v37, 1 }
  0xd6   : > { %v452_v41 = vadd.f32 %v451_v39, %v450_v37 }
  0xd8   : > { %v454_v42 = vsub.f32 %v452_v41, %v453_v40 }
  0xda   : > { %v462_v43 = vsel %vm461_vm1, %v454_v42, 0.0 }
  0xdb   : > { %v464_v45 = vmul.f32 %v462_v43, %v462_v43 }
  0xdd   : > { %v465_v46 = vadd.f32 %v464_v45, %v463_v44 }
  0xdf   : > { %466 = vst [vmem:[#allocation2] sm:$0x1] %v465_v46 }
  0xe6   : > { %v470_v47 = vld [vmem:[#allocation2] sm:$0x1] }
  0xe7   : > { %v472_v48 = vsel %vm471_vm2, %v470_v47, 0.0 }
  0xe8   : > { %473 = vadd.xlane.f32.xlu0 %v472_v48 }
 0x15b   : > { %v474_v49 = vpop.xlane.xlu0 %473 }
 0x15c   : > { %476 = vst.msk [vmem:[%s298_s15] sm:$0x1] %vm475_vm3, %v474_v49 }
 0x15d PF: > { %s18_s20 = sadd.s32 1, %s866_s20   ;;  %s1055_s15 = smov %s850_s16 }
 0x15e   : > { %p15_p2 = scmp.ge.s32.totalorder %s18_s20, 4   ;;  %s1056_s16 = smov %s854_s17 }
 0x15f   : > { %s1057_s17 = smov %s947_s27  ;;  %s1058_s18 = smov %s862_s19 }
 0x160   : > { %s1059_s19 = smov %s1061_s21  ;;  %17 = sbr.rel (!%p15_p2) target bundleno = 5 (0x5), region = 103 }
 0x165   :  { %494 = vsyncpa [#allocation4], 1 }
 0x166   :  { %496 = vsyncpa [#allocation4 + $0x1], 1 }
 0x167   :  { %497 = vsyncpa [#allocation6], 1 }
 0x168   :  { %499 = vsyncpa [#allocation6 + $0x1], 1 }

</bundles_post_ra>
